<compile_context>
chip_gen: v6e
topology: v6e:2x2x1
jax: 0.10.0
libtpu: 0.0.40
codegen_flags: <defaults>
</compile_context>

<pallas_src>
import math

import jax
import jax.numpy as jnp
from jax.experimental import pallas as pl
from jax.experimental.pallas import tpu as pltpu


def _offset_scale_kernel(x_ref, gamma_ref, beta_ref, out_ref):
    # x_ref:     (tn, Df)      one row tile of the (folded) input
    # gamma_ref: (H, Df)       VMEM-resident params for all heads
    # beta_ref:  (H, Df)
    # out_ref:   (H, tn, Df)   all heads for this row tile
    x = x_ref[...]
    n_heads = gamma_ref.shape[0]
    for h in range(n_heads):  # H is small and static -> fully unrolled
        out_ref[h] = x * gamma_ref[h : h + 1, :] + beta_ref[h : h + 1, :]


def _offset_scale_xla(x, gamma, beta):
    out = x[..., None, :] * gamma + beta
    return tuple(out[..., h, :] for h in range(gamma.shape[0]))


def _round_up(a, b):
    return ((a + b - 1) // b) * b


def _choose_fold(d):
    """Fold factor so the fused last dim is a multiple of 128 (lane-dense stores)."""
    if d % 128 == 0:
        return 1
    fold = 128 // math.gcd(d, 128)
    if fold * d > 2048:  # keep fused rows a sane width; full-dim block is still legal
        return 1
    return fold


def _choose_row_tile(nf_rows, fused_d, n_heads, itemsize,
                     max_rows=1024, vmem_budget_bytes=12 * 1024 * 1024):
    """Largest row tile whose double-buffered in + (H x) out tiles fit the VMEM budget."""
    per_row = 2 * (1 + n_heads) * fused_d * itemsize       # dbl-buffered in + out per row
    param_bytes = 2 * n_heads * fused_d * itemsize          # resident gamma/beta
    budget = max(vmem_budget_bytes - param_bytes, per_row * 8)
    tn = budget // per_row
    tn = min(tn, max_rows, _round_up(nf_rows, 8))
    tn = max(8, (tn // 8) * 8)
    return int(tn)


def offset_scale(x, gamma, beta, *, force_pallas=False,
                 max_rows_per_tile=1024, vmem_budget_bytes=12 * 1024 * 1024):
    """x: (..., D); gamma, beta: (H, D). Returns tuple of H arrays of shape x.shape."""
    H, D = gamma.shape
    orig_shape = x.shape
    assert orig_shape[-1] == D
    N = 1
    for s in orig_shape[:-1]:
        N *= s

    # Tiny problems: pallas_call launch + per-step overhead dwarfs the memory traffic;
    # XLA's fused broadcast is already at roofline there.
    if not force_pallas and N * D < (1 << 17):
        return _offset_scale_xla(x, gamma, beta)

    x2 = x.reshape(N, D)
    itemsize = jnp.dtype(x.dtype).itemsize

    # Fold rows so the stored last dim is lane-dense when D is small (e.g. D=32 -> 128).
    fold = _choose_fold(D)
    Df = D * fold

    nf_rows = pl.cdiv(N, fold)
    tn = _choose_row_tile(nf_rows, Df, H, itemsize,
                          max_rows=max_rows_per_tile,
                          vmem_budget_bytes=vmem_budget_bytes)
    grid_n = pl.cdiv(nf_rows, tn)
    nf_pad = grid_n * tn
    n_pad = nf_pad * fold

    if n_pad != N:
        x2 = jnp.pad(x2, ((0, n_pad - N), (0, 0)))
    x3 = x2.reshape(nf_pad, Df)

    g = jnp.tile(gamma, (1, fold)) if fold > 1 else gamma
    b = jnp.tile(beta, (1, fold)) if fold > 1 else beta

    out = pl.pallas_call(
        _offset_scale_kernel,
        out_shape=jax.ShapeDtypeStruct((H, nf_pad, Df), x.dtype),
        grid_spec=pltpu.PrefetchScalarGridSpec(
            num_scalar_prefetch=0,
            grid=(grid_n,),
            in_specs=[
                pl.BlockSpec((tn, Df), lambda i: (i, 0)),   # x row tile, read once
                pl.BlockSpec((H, Df), lambda i: (0, 0)),    # gamma resident for whole grid
                pl.BlockSpec((H, Df), lambda i: (0, 0)),    # beta resident for whole grid
            ],
            out_specs=pl.BlockSpec((H, tn, Df), lambda i: (0, i, 0)),
        ),
        compiler_params=pltpu.CompilerParams(
            dimension_semantics=("parallel",),  # shards row tiles across TCs on v7x
        ),
    )(x3, g, b)

    out = out.reshape(H, n_pad, D)[:, :N, :].reshape((H,) + orig_shape)
    return tuple(out[h] for h in range(H))


if __name__ == "__main__":
    # Shapes consistent with OffsetScale: x has trailing dim `dim`, params are (heads, dim).
    B, S, D, H = 2, 8, 32, 2

    key = jax.random.PRNGKey(0)
    kx, kg = jax.random.split(key)

    x = jax.random.normal(kx, (B, S, D), dtype=jnp.float32)
    # Parameter init mirroring nn.init.normal_(gamma, std=0.02), beta = zeros.
    gamma = 0.02 * jax.random.normal(kg, (H, D), dtype=jnp.float32)
    beta = jnp.zeros((H, D), dtype=jnp.float32)

    # force_pallas=True so the demo exercises the kernel even at this tiny size.
    outs = offset_scale(x, gamma, beta, force_pallas=True)
    outs = jax.block_until_ready(outs)

    # Reference check (plain JAX) for the same semantics.
    ref = x[..., None, :] * gamma + beta  # (B, S, H, D)
    for h in range(H):
        assert jnp.allclose(outs[h], ref[..., h, :], atol=1e-6), f"mismatch at head {h}"

    print("KERNEL_OK")
</pallas_src>

<mosaic_0001>
module attributes {stable_mosaic.version = 11 : i64} {
  func.func @_offset_scale_kernel(%arg0: i32, %arg1: memref<8x128xf32, #tpu.memory_space<vmem>>, %arg2: memref<2x128xf32, #tpu.memory_space<vmem>>, %arg3: memref<2x128xf32, #tpu.memory_space<vmem>>, %arg4: memref<2x8x128xf32, #tpu.memory_space<vmem>>) attributes {dimension_semantics = [#tpu.dimension_semantics<parallel>], iteration_bounds = array<i64: 1>, scalar_prefetch = 0 : i64, scratch_operands = 0 : i64, tpu.core_type = #tpu.core_type<tc>, window_params = [{transform_indices = @transform_0, window_bounds = array<i64: 8, 128>}, {pipeline_mode = #tpu.pipeline_mode<synchronous>, transform_indices = @transform_1, window_bounds = array<i64: 2, 128>}, {pipeline_mode = #tpu.pipeline_mode<synchronous>, transform_indices = @transform_2, window_bounds = array<i64: 2, 128>}, {transform_indices = @transform_3, window_bounds = array<i64: 2, 8, 128>}]} {
    %c0 = arith.constant 0 : index
    %c0_0 = arith.constant 0 : index
    %0 = vector.load %arg1[%c0, %c0_0] : memref<8x128xf32, #tpu.memory_space<vmem>>, vector<8x128xf32>
    %c0_1 = arith.constant 0 : index
    %c0_2 = arith.constant 0 : index
    %1 = vector.load %arg2[%c0_1, %c0_2] : memref<2x128xf32, #tpu.memory_space<vmem>>, vector<1x128xf32>
    %2 = vector.broadcast %1 : vector<1x128xf32> to vector<8x128xf32>
    %3 = arith.mulf %0, %2 : vector<8x128xf32>
    %c0_3 = arith.constant 0 : index
    %c0_4 = arith.constant 0 : index
    %4 = vector.load %arg3[%c0_3, %c0_4] : memref<2x128xf32, #tpu.memory_space<vmem>>, vector<1x128xf32>
    %5 = vector.broadcast %4 : vector<1x128xf32> to vector<8x128xf32>
    %6 = arith.addf %3, %5 : vector<8x128xf32>
    %c0_5 = arith.constant 0 : index
    %c0_6 = arith.constant 0 : index
    %c0_7 = arith.constant 0 : index
    %7 = vector.load %arg4[%c0_5, %c0_6, %c0_7] : memref<2x8x128xf32, #tpu.memory_space<vmem>>, vector<1x8x128xf32>
    %8 = vector.shape_cast %7 : vector<1x8x128xf32> to vector<8x128xf32>
    %9 = vector.shape_cast %6 : vector<8x128xf32> to vector<1x8x128xf32>
    tpu.vector_store %arg4[%c0_5, %c0_6, %c0_7], %9 {strides = array<i32>} : memref<2x8x128xf32, #tpu.memory_space<vmem>>, vector<1x8x128xf32>,
    %c1 = arith.constant 1 : index
    %c0_8 = arith.constant 0 : index
    %10 = vector.load %arg2[%c1, %c0_8] : memref<2x128xf32, #tpu.memory_space<vmem>>, vector<1x128xf32>
    %11 = vector.broadcast %10 : vector<1x128xf32> to vector<8x128xf32>
    %12 = arith.mulf %0, %11 : vector<8x128xf32>
    %c1_9 = arith.constant 1 : index
    %c0_10 = arith.constant 0 : index
    %13 = vector.load %arg3[%c1_9, %c0_10] : memref<2x128xf32, #tpu.memory_space<vmem>>, vector<1x128xf32>
    %14 = vector.broadcast %13 : vector<1x128xf32> to vector<8x128xf32>
    %15 = arith.addf %12, %14 : vector<8x128xf32>
    %c1_11 = arith.constant 1 : index
    %c0_12 = arith.constant 0 : index
    %c0_13 = arith.constant 0 : index
    %16 = vector.load %arg4[%c1_11, %c0_12, %c0_13] : memref<2x8x128xf32, #tpu.memory_space<vmem>>, vector<1x8x128xf32>
    %17 = vector.shape_cast %16 : vector<1x8x128xf32> to vector<8x128xf32>
    %18 = vector.shape_cast %15 : vector<8x128xf32> to vector<1x8x128xf32>
    tpu.vector_store %arg4[%c1_11, %c0_12, %c0_13], %18 {strides = array<i32>} : memref<2x8x128xf32, #tpu.memory_space<vmem>>, vector<1x8x128xf32>,
    return
  }
  func.func @transform_0(%arg0: i32) -> (i32, i32) {
    %c0_i32 = arith.constant 0 : i32
    %c0_i32_0 = arith.constant 0 : i32
    return %arg0, %c0_i32 : i32, i32
  }
  func.func @transform_1(%arg0: i32) -> (i32, i32) {
    %c0_i32 = arith.constant 0 : i32
    %c0_i32_0 = arith.constant 0 : i32
    %c0_i32_1 = arith.constant 0 : i32
    return %c0_i32, %c0_i32_0 : i32, i32
  }
  func.func @transform_2(%arg0: i32) -> (i32, i32) {
    %c0_i32 = arith.constant 0 : i32
    %c0_i32_0 = arith.constant 0 : i32
    %c0_i32_1 = arith.constant 0 : i32
    return %c0_i32, %c0_i32_0 : i32, i32
  }
  func.func @transform_3(%arg0: i32) -> (i32, i32, i32) {
    %c0_i32 = arith.constant 0 : i32
    %c0_i32_0 = arith.constant 0 : i32
    %c0_i32_1 = arith.constant 0 : i32
    return %c0_i32, %arg0, %c0_i32_0 : i32, i32, i32
  }
}

</mosaic_0001>

<bundles_post_ra>
// kernel: tpu_custom_call.1
= control target key start
LH: loop header
LB: loop body
LE: loop exit
PB: predicated region body
PF: predicated region fallthrough
CT: control target
= control target key end

     0   :  { %8 = vsyncpa [#allocation3], 0  ;;  %s200_s0 = inlined_call_operand.hbm [shape: f32[8,128], index: 0, kind: input, shape index: {}]   ;;  %s201_s1 = inlined_call_operand.hbm [shape: f32[2,128], index: 1, kind: input, shape index: {}]   ;;  %s202_s2 = inlined_call_operand.vmem [shape: f32[2,128], index: 2, kind: input, shape index: {}]   ;;  %s203_s3 = inlined_call_operand.hbm [shape: f32[2,8,128], index: 3, kind: output, shape index: {}]  }
   0x1   :  { %9 = vsyncpa [#allocation6], 0 }
   0x2   :  { %10 = vsyncpa [#allocation4], 0  ;;  %s160_s12 = smov [#allocation2]   ;;  %s161_s14 = smov [#allocation5]  }
   0x3   :  { %s17_s13 = sshll.u32 %s160_s12, 4  ;;  %s27_s15 = sshll.u32 %s161_s14, 4  ;;  %s18_s13 = int_to_ptr.vmem [resolvable:$true] %s17_s13  ;;  %s28_s15 = int_to_ptr.vmem [resolvable:$true] %s27_s15 }
   0x4   :  { %s102_s16 = scalar_lea.vmem %s18_s13, 128  ;;  %p107_p1 = scmp.lt.s32.totalorder %s18_s13, %s18_s13 }
   0x5   :  { %p103_p0 = scmp.ne.s32.totalorder %s18_s13, %s102_s16  ;;  %p108_p2 = scmp.lt.s32.totalorder %s102_s16, %s102_s16 }
   0x7   :  { %p109_p3 = por %p108_p2, %p107_p1 }
   0x9   :  { %p110_p4 = pnand %p109_p3, %p103_p0 }
   0xb   :  { %113 = shalt.err (!%p110_p4)
}
   0xc   :  { %20 = dma.hbm_to_vmem [thread:$0]  %s200_s0, 128, %s18_s13, [#allocation3]  }
   0xd   :  { %s122_s19 = scalar_lea.vmem %s28_s15, 32  ;;  %p127_p6 = scmp.lt.s32.totalorder %s28_s15, %s28_s15 }
   0xe   :  { %p123_p5 = scmp.ne.s32.totalorder %s28_s15, %s122_s19  ;;  %p128_p7 = scmp.lt.s32.totalorder %s122_s19, %s122_s19 }
  0x10   :  { %p129_p8 = por %p128_p7, %p127_p6 }
  0x12   :  { %p130_p9 = pnand %p129_p8, %p123_p5 }
  0x14   :  { %133 = shalt.err (!%p130_p9)
}
  0x15   :  { %30 = dma.hbm_to_vmem [thread:$0]  %s201_s1, 32, %s28_s15, [#allocation6]  }
  0x16   :  { %154 = dma.done.wait [#allocation3], 128  }
  0x17   :  { %155 = vsyncadd [#allocation3], 4294967168 }
  0x18   :  { %156 = dma.done.wait [#allocation6], 32  }
  0x19   :  { %157 = vsyncadd [#allocation6], 4294967264  ;;  %v39_v0 = vld [vmem:[#allocation2] sm:$0xff]  ;;  %v85_v1 = vld [vmem:[#allocation5] ss:$0 sm:$0xff]  ;;  %s162_s25 = smov [#allocation7]  }
  0x1a   :  { %v86_v2 = vld [vmem:[%s202_s2] ss:$0 sm:$0xff]  ;;  %v45_v3 = vmul.f32 %v85_v1, %v39_v0  ;;  %v87_v4 = vld [vmem:[#allocation5 + $0x1] ss:$0 sm:$0xff]  ;;  %v88_v5 = vld [vmem:[%s202_s2 + $0x1] ss:$0 sm:$0xff] }
  0x1b   :  { %s72_s26 = sshll.u32 %s162_s25, 4  ;;  %v58_v6 = vmul.f32 %v87_v4, %v39_v0  ;;  %s73_s26 = int_to_ptr.vmem [resolvable:$true] %s72_s26 }
  0x1c   :  { %v51_v7 = vadd.f32 %v86_v2, %v45_v3  ;;  %s134_s1 = scalar_lea.vmem %s73_s26, 256  ;;  %p139_p11 = scmp.lt.s32.totalorder %s73_s26, %s73_s26 }
  0x1d   :  { %v64_v8 = vadd.f32 %v88_v5, %v58_v6  ;;  %p135_p10 = scmp.ne.s32.totalorder %s73_s26, %s134_s1  ;;  %p140_p12 = scmp.lt.s32.totalorder %s134_s1, %s134_s1 }
  0x1e   :  { %52 = vst [vmem:[#allocation7] sm:$0xff] %v51_v7 }
  0x1f   :  { %66 = vst [vmem:[#allocation7 + $0x8] sm:$0xff] %v64_v8  ;;  %p141_p13 = por %p140_p12, %p139_p11 }
  0x21   :  { %p142_p0 = pnand %p141_p13, %p135_p10 }
  0x23   :  { %145 = shalt.err (!%p142_p0)
}
  0x24   :  { %s163_s27 = smov 128   ;;  %s164_s28 = smov 8  }
  0x25   :  { %78 = dma.vmem_to_hbm [thread:$0]  %s73_s26, 256, %s203_s3, [#allocation4], %s163_s27, %s163_s27, %s164_s28  }
  0x26   :  { %158 = dma.done.wait [#allocation4], 256  }
  0x27   :  { %159 = vsyncadd [#allocation4], 4294967040 }
  0x28   :  { %82 = vsyncpa [#allocation3], 1 }
  0x29   :  { %83 = vsyncpa [#allocation6], 1 }
  0x2a   :  { %84 = vsyncpa [#allocation4], 1 }

</bundles_post_ra>
